<compile_context>
chip_gen: v7x
topology: tpu7x:2x2x1
jax: 0.10.0
libtpu: 0.0.40
codegen_flags: <defaults>
</compile_context>

<pallas_src>
import jax
import jax.numpy as jnp
import numpy as np
from jax.experimental import pallas as pl
from jax.experimental.pallas import tpu as pltpu


# ----------------------------- Pallas kernel ----------------------------------

def _add_pos_kernel(x_ref, pos_ref, out_ref):
    """out = x + pos  (pos broadcast over the batch/sublane axis).

    x_ref/out_ref: (rows, S*D) lane-dense slab in VMEM.
    pos_ref      : (1,   S*D) learned positions, already permuted/sliced/
                   flattened in the wrapper (layout plumbing only).
    """
    out_ref[...] = x_ref[...] + pos_ref[...]


# ----------------------------- wrapper -----------------------------------------

_VMEM = pl.BlockSpec(memory_space=pltpu.MemorySpace.VMEM)


def position_embedding_learned_1d(x, pe, *, batch_tile=8):
    """Pallas forward of PositionEmbeddingLearned1D.

    x  : (B, S, D) float32
    pe : (max_len, 1, D) float32 learned parameter
    returns (B, S, D):  x + pe.permute(1,0,2)[:, :S, :]
    """
    B, S, D = x.shape
    max_len, one, d_model = pe.shape
    assert one == 1 and d_model == D and S <= max_len

    # pe.permute(1,0,2)[:, :S, :] -> (1, S, D); flatten to a lane-dense row.
    # Doing this on the tiny parameter in the wrapper is free layout plumbing.
    pos2 = pe[:S, 0, :].reshape(1, S * D)
    x2 = x.reshape(B, S * D)
    out_shape = jax.ShapeDtypeStruct((B, S * D), x.dtype)

    if B > batch_tile and B % batch_tile == 0:
        # Large batch: tile the batch rows and mark the axis "parallel" so both
        # TensorCores on v7x share the work.  `pos` is revisited (block 0) by
        # every grid step and stays resident.
        out2 = pl.pallas_call(
            _add_pos_kernel,
            out_shape=out_shape,
            grid=(B // batch_tile,),
            in_specs=[pl.BlockSpec((batch_tile, S * D), lambda i: (i, 0)),
                      pl.BlockSpec((1, S * D), lambda i: (0, 0))],
            out_specs=pl.BlockSpec((batch_tile, S * D), lambda i: (i, 0)),
            compiler_params=pltpu.CompilerParams(
                dimension_semantics=("parallel",)),
        )(x2, pos2)
    else:
        # Small problem (demo size): single call, single grid step, full arrays
        # resident in VMEM -- per-call overhead dominates, so keep it to one.
        # TODO(synk): if B*S*D ever exceeds the VMEM budget (64 MiB on v7x),
        #             force the tiled path / shrink batch_tile accordingly.
        out2 = pl.pallas_call(
            _add_pos_kernel,
            out_shape=out_shape,
            in_specs=[_VMEM, _VMEM],
            out_specs=_VMEM,
        )(x2, pos2)

    return out2.reshape(B, S, D)


# ----------------------------- pure-JAX reference ------------------------------

def ref_forward(x, pe):
    S = x.shape[1]
    return x + jnp.transpose(pe, (1, 0, 2))[:, :S, :]


# ----------------------------- main ---------------------------------------------

if __name__ == "__main__":
    MAX_LEN, D = 500, 32            # module defaults: d_model=32, max_len=500
    B, S = 2, 8                     # small demo shapes (batch=2, seq=8)

    key = jax.random.PRNGKey(0)
    k_pe, k_x1, k_x2 = jax.random.split(key, 3)

    # nn.init.uniform_(self.pe)  ->  uniform[0, 1)
    pe = jax.random.uniform(k_pe, (MAX_LEN, 1, D), jnp.float32)
    x = jax.random.normal(k_x1, (B, S, D), jnp.float32)

    fwd = jax.jit(position_embedding_learned_1d)

    # Small-batch (single-block) path.
    out = jax.block_until_ready(fwd(x, pe))
    np.testing.assert_allclose(np.asarray(out), np.asarray(ref_forward(x, pe)),
                               rtol=1e-6, atol=1e-6)
    assert out.shape == (B, S, D) and np.all(np.isfinite(np.asarray(out)))

    # Larger batch exercises the tiled / "parallel" grid path.
    xb = jax.random.normal(k_x2, (16, 24, D), jnp.float32)
    outb = jax.block_until_ready(fwd(xb, pe))
    np.testing.assert_allclose(np.asarray(outb), np.asarray(ref_forward(xb, pe)),
                               rtol=1e-6, atol=1e-6)

    print("KERNEL_OK")
</pallas_src>

<mosaic_0001>
module attributes {stable_mosaic.version = 11 : i64} {
  func.func @_add_pos_kernel(%arg0: memref<2x256xf32, #tpu.memory_space<vmem>>, %arg1: memref<1x256xf32, #tpu.memory_space<vmem>>, %arg2: memref<2x256xf32, #tpu.memory_space<vmem>>) attributes {dimension_semantics = [], scalar_prefetch = 0 : i64, scratch_operands = 0 : i64, tpu.core_type = #tpu.core_type<tc>} {
    %c0 = arith.constant 0 : index
    %c0_0 = arith.constant 0 : index
    %0 = vector.load %arg0[%c0, %c0_0] : memref<2x256xf32, #tpu.memory_space<vmem>>, vector<2x256xf32>
    %c0_1 = arith.constant 0 : index
    %c0_2 = arith.constant 0 : index
    %1 = vector.load %arg1[%c0_1, %c0_2] : memref<1x256xf32, #tpu.memory_space<vmem>>, vector<1x256xf32>
    %2 = vector.broadcast %1 : vector<1x256xf32> to vector<2x256xf32>
    %3 = arith.addf %0, %2 : vector<2x256xf32>
    %c0_3 = arith.constant 0 : index
    %c0_4 = arith.constant 0 : index
    %4 = vector.load %arg2[%c0_3, %c0_4] : memref<2x256xf32, #tpu.memory_space<vmem>>, vector<2x256xf32>
    tpu.vector_store %arg2[%c0_3, %c0_4], %3 {strides = array<i32>} : memref<2x256xf32, #tpu.memory_space<vmem>>, vector<2x256xf32>,
    return
  }
}

</mosaic_0001>

<bundles_post_ra>
// kernel: squeeze.1
= control target key start
LH: loop header
LB: loop body
LE: loop exit
PB: predicated region body
PF: predicated region fallthrough
CT: control target
= control target key end

     0   :  { %s7_s6 = smov 3  ;;  %s14_s9 = smov 3  ;;  %vm4_vm0 = vcmask 261120   ;;  %vm11_vm1 = vcmask 1048320   ;;  %vm18_vm2 = vcmask 785920   ;;  %vm25_vm3 = vcmask 523520   ;;  %s76_s0 = inlined_call_operand.vmem [shape: f32[8,1,32], index: 0, kind: input, shape index: {}]   ;;  %s77_s1 = inlined_call_operand.vmem [shape: f32[1,256], index: 1, kind: output, shape index: {}]  }
   0x1   :  { %v38_v0 = vld [vmem:[%s76_s0 + $0x3] ss:$4 sm:%s7_s6]   ;;  %s45_s10 = smov 96   ;;  %s21_s11 = smov 3  ;;  %v39_v1 = vld [vmem:[%s76_s0 + $0x2] ss:$4 sm:%s14_s9]  }
   0x2   :  { %9 = vrot.lane.b32.xlu0 %v38_v0, %s45_s10  ;;  %v40_v2 = vld [vmem:[%s76_s0 + $0x1] ss:$4 sm:%s21_s11]   ;;  %s2_s16 = smov 3  ;;  %s46_s17 = smov 32  }
   0x3   :  { %23 = vrot.lane.b32.xlu1 %v40_v2, %s46_s17  ;;  %v3_v3 = vld [vmem:[%s76_s0] ss:$4 sm:%s2_s16]   ;;  %s47_s0 = smov 64  }
   0x4   :  { %5 = vst.msk [vmem:[#allocation0] ss:$8 sm:$0x3] %vm4_vm0, %v3_v3  }
   0x6   :  { %16 = vrot.lane.b32.xlu0 %v39_v1, %s47_s0 }
  0x74   :  { %v10_v4 = vpop.permute.xlu0 %9  }
  0x75   :  { %12 = vst.msk [vmem:[#allocation0] ss:$8 sm:$0x3] %vm11_vm1, %v10_v4   ;;  %v24_v5 = vpop.permute.xlu1 %23  }
  0x78   :  { %v17_v6 = vpop.permute.xlu0 %16  }
  0x79   :  { %19 = vst.msk [vmem:[#allocation0] ss:$8 sm:$0x3] %vm18_vm2, %v17_v6  }
  0x7a   :  { %26 = vst.msk [vmem:[#allocation0] ss:$8 sm:$0x3] %vm25_vm3, %v24_v5  }
  0x81   :  { %v30_v7 = vld [vmem:[#allocation0] sm:$0x1]  ;;  %v34_v8 = vld [vmem:[#allocation0 + $0x8] sm:$0x1] }
  0x82   :  { %32 = vst [vmem:[%s77_s1] sm:$0x1] %v30_v7  ;;  %41 = vst [vmem:[%s77_s1 + $0x1] sm:$0x1] %v34_v8 }

// kernel: position_embedding_learned_1d.1
= control target key start
LH: loop header
LB: loop body
LE: loop exit
PB: predicated region body
PF: predicated region fallthrough
CT: control target
= control target key end

     0   :  { %v14_v0 = vlaneseq  ;;  %v38_v1 = vmov 1983009808   ;;  %s63_s1 = inlined_call_operand.vmem [shape: f32[1,256], index: 1, kind: input, shape index: {}]   ;;  %s64_s0 = inlined_call_operand.vmem [shape: f32[2,256], index: 0, kind: input, shape index: {}]   ;;  %s65_s2 = inlined_call_operand.vmem [shape: f32[2,256], index: 2, kind: output, shape index: {}]  }
   0x1   :  { %v24_v2 = vunpack.c.l.s4 %v38_v1  ;;  %v12_v4 = vld [vmem:[%s63_s1] sm:$0x3] }
   0x2   :  { %v15_v3 = vshrl.u32 %v14_v0, 7  ;;  %v11_v12 = vld [vmem:[%s64_s0] sm:$0xf] }
   0x3   :  { %v25_v5 = vunpack.c.0.s8 %v24_v2 }
   0x4   :  { %v16_v6 = vsub.s32 0, %v15_v3  ;;  %v20_v7 = vsub.s32 1, %v15_v3 }
   0x5   :  { %v28_v10 = vsub.s32 %v25_v5, %v15_v3 }
   0x6   :  { %v17_v8 = vrot.slane %v12_v4, %v16_v6  ;;  %v21_v9 = vrot.slane %v12_v4, %v20_v7 }
   0x8   :  { %v22_v11 = vcombine.low %v17_v8, %v21_v9 }
   0xa   :  { %v29_v13 = vrot.slane %v22_v11, %v28_v10 }
   0xc   :  { %v31_v14 = vadd.f32 %v29_v13, %v11_v12 }
   0xe   :  { %32 = vst [vmem:[%s65_s2] sm:$0xf] %v31_v14 }

</bundles_post_ra>
